<compile_context>
chip_gen: v7x
topology: tpu7x:2x2x1
jax: 0.10.0
libtpu: 0.0.40
codegen_flags: <defaults>
</compile_context>

<pallas_src>
import functools

import jax
import jax.numpy as jnp
import numpy as np
from jax import lax
from jax.experimental import pallas as pl
from jax.experimental.pallas import tpu as pltpu

_LANE = 128


def _round_up(x, m):
    return (x + m - 1) // m * m


def _matmul_bn_lrelu_kernel(p_ref, w_ref, s_ref, b_ref, o_ref, *, cout, slope):
    """One M-tile per grid step.

    p_ref : (TM, K_pad)       lane-dense im2col patch tile (compute_dtype)
    w_ref : (K_pad, Cout_pad) pre-packed conv weights, lane-dense (compute_dtype)
    s_ref : (1, Cout)         folded BN scale  = gamma / sqrt(var + eps)   (f32)
    b_ref : (1, Cout)         folded BN bias   = (conv_bias - mean)*scale + beta
    o_ref : (TM, Cout)        unpadded output tile
    """
    # Single MXU matmul, f32 accumulation.
    acc = jnp.dot(p_ref[...], w_ref[...], preferred_element_type=jnp.float32)
    # Epilogue only on the real Cout lanes (lanes 0..Cout-1 stay in place: no
    # cross-lane relayout).
    y = acc[:, :cout] * s_ref[...] + b_ref[...]
    y = jnp.where(y > 0.0, y, slope * y)
    o_ref[...] = y.astype(o_ref.dtype)


def conv_bn_leakyrelu_nhwc(x_nhwc, weight, conv_bias, gamma, beta, run_mean,
                           run_var, *, padding=0, stride=1, dilation=1,
                           eps=1e-5, slope=0.1, compute_dtype=jnp.float32,
                           m_tile=None):
    """NHWC core.  x_nhwc: (N, H, W, Cin) float32 -> (N, Hout, Wout, Cout).

    compute_dtype: matmul operand dtype.  Use jnp.bfloat16 on v6e/v7x (halves
    operand DMA bytes, free bf16 MXU path); keep f32 on v5e.  Accumulation and
    the BN/LeakyReLU epilogue are always f32.
    """
    assert dilation == 1, "dilation != 1 not supported by this kernel"
    N, H, W, Cin = x_nhwc.shape
    Cout, Cin_w, KH, KW = weight.shape
    assert Cin_w == Cin
    Hout = (H + 2 * padding - (KH - 1) - 1) // stride + 1
    Wout = (W + 2 * padding - (KW - 1) - 1) // stride + 1

    K = KH * KW * Cin
    K_pad = _round_up(K, _LANE)
    Cout_pad = _round_up(Cout, _LANE)
    M_total = N * Hout * Wout

    # M-tile: 512 rows feeds the 256-wide v6e/v7x MXUs well; smaller problems
    # use 256 (or the whole problem) so the grid still has some depth.
    if m_tile is None:
        m_tile = 512 if M_total >= 2048 else 256
    m_tile = _round_up(min(m_tile, _round_up(M_total, 8)), 8)
    M_pad = _round_up(M_total, m_tile)
    num_m = M_pad // m_tile

    # ---- spatial pad + im2col in plain JAX (outside the kernel) ----
    # stride > 1 is a strided slice HERE (XLA / DMA), never inside the kernel.
    xp = jnp.pad(x_nhwc, ((0, 0), (padding, padding), (padding, padding), (0, 0)))
    taps = []
    for kh in range(KH):
        for kw in range(KW):
            taps.append(xp[:,
                           kh:kh + (Hout - 1) * stride + 1:stride,
                           kw:kw + (Wout - 1) * stride + 1:stride, :])
    # Tap order kh-major, then kw, then cin — must match the weight prepack.
    patches = jnp.concatenate(taps, axis=-1)               # (N, Hout, Wout, K)
    patches = patches.reshape(M_total, K)
    patches = jnp.pad(patches, ((0, M_pad - M_total), (0, K_pad - K)))
    patches = patches.astype(compute_dtype)                # lane-dense (M_pad, 128)

    # ---- weight prepack: (Cout, Cin, KH, KW) -> (K_pad, Cout_pad), bf16/f32 ----
    w2d = jnp.transpose(weight, (2, 3, 1, 0)).reshape(K, Cout)
    w2d = jnp.pad(w2d, ((0, K_pad - K), (0, Cout_pad - Cout))).astype(compute_dtype)

    # ---- BN folding (inference: running statistics), f32 ----
    scale = (gamma / jnp.sqrt(run_var + eps)).astype(jnp.float32)        # (Cout,)
    bias = ((conv_bias - run_mean) * scale + beta).astype(jnp.float32)   # (Cout,)
    scale2d = scale.reshape(1, Cout)
    bias2d = bias.reshape(1, Cout)

    kernel = functools.partial(_matmul_bn_lrelu_kernel, cout=Cout, slope=slope)

    out2d = pl.pallas_call(
        kernel,
        out_shape=jax.ShapeDtypeStruct((M_pad, Cout), x_nhwc.dtype),
        grid_spec=pltpu.PrefetchScalarGridSpec(
            num_scalar_prefetch=0,
            grid=(num_m,),
            in_specs=[
                pl.BlockSpec((m_tile, K_pad), lambda m: (m, 0)),
                pl.BlockSpec((K_pad, Cout_pad), lambda m: (0, 0)),   # resident
                pl.BlockSpec((1, Cout), lambda m: (0, 0)),           # resident
                pl.BlockSpec((1, Cout), lambda m: (0, 0)),           # resident
            ],
            out_specs=pl.BlockSpec((m_tile, Cout), lambda m: (m, 0)),
        ),
        compiler_params=pltpu.CompilerParams(
            dimension_semantics=("parallel",),
            vmem_limit_bytes=48 * 1024 * 1024),
    )(patches, w2d, scale2d, bias2d)

    return out2d[:M_total].reshape(N, Hout, Wout, Cout)


def conv_bn_leakyrelu(x_nchw, weight, conv_bias, gamma, beta, run_mean, run_var,
                      *, padding=0, stride=1, dilation=1, eps=1e-5, slope=0.1,
                      compute_dtype=jnp.float32, m_tile=None):
    """PyTorch-facing NCHW wrapper.  x_nchw: (N, Cin, H, W) float32."""
    x_nhwc = jnp.transpose(x_nchw, (0, 2, 3, 1))
    out_nhwc = conv_bn_leakyrelu_nhwc(
        x_nhwc, weight, conv_bias, gamma, beta, run_mean, run_var,
        padding=padding, stride=stride, dilation=dilation, eps=eps,
        slope=slope, compute_dtype=compute_dtype, m_tile=m_tile)
    return jnp.transpose(out_nhwc, (0, 3, 1, 2))


def _reference(x_nchw, weight, conv_bias, gamma, beta, run_mean, run_var,
               *, padding, stride, eps=1e-5, slope=0.1):
    y = lax.conv_general_dilated(
        x_nchw, weight,
        window_strides=(stride, stride),
        padding=((padding, padding), (padding, padding)),
        dimension_numbers=("NCHW", "OIHW", "NCHW"))
    y = y + conv_bias[None, :, None, None]
    y = (y - run_mean[None, :, None, None]) / jnp.sqrt(
        run_var[None, :, None, None] + eps)
    y = y * gamma[None, :, None, None] + beta[None, :, None, None]
    return jnp.where(y > 0, y, slope * y)


if __name__ == "__main__":
    # Module config: Conv_BN_LeakyReLU(in_channels=4, out_channels=8, ksize=3,
    #                                  padding=1, stride=1)
    N, Cin, H, W = 2, 4, 16, 16
    Cout, KH, KW = 8, 3, 3

    key = jax.random.PRNGKey(0)
    kx, kw, kb, kg, kbeta, km, kv = jax.random.split(key, 7)

    x = jax.random.normal(kx, (N, Cin, H, W), dtype=jnp.float32)
    weight = 0.1 * jax.random.normal(kw, (Cout, Cin, KH, KW), dtype=jnp.float32)
    conv_bias = 0.05 * jax.random.normal(kb, (Cout,), dtype=jnp.float32)
    # BatchNorm2d params (inference mode: running statistics).
    gamma = 1.0 + 0.1 * jax.random.normal(kg, (Cout,), dtype=jnp.float32)
    beta = 0.1 * jax.random.normal(kbeta, (Cout,), dtype=jnp.float32)
    run_mean = 0.1 * jax.random.normal(km, (Cout,), dtype=jnp.float32)
    run_var = jnp.abs(1.0 + 0.1 * jax.random.normal(kv, (Cout,), dtype=jnp.float32))

    # --- stride=1, padding=1: f32 matmul operands (tight tolerance) ---
    ref = _reference(x, weight, conv_bias, gamma, beta, run_mean, run_var,
                     padding=1, stride=1)
    out = conv_bn_leakyrelu(x, weight, conv_bias, gamma, beta, run_mean,
                            run_var, padding=1, stride=1,
                            compute_dtype=jnp.float32)
    out = jax.block_until_ready(out)
    np.testing.assert_allclose(np.asarray(out), np.asarray(ref),
                               rtol=1e-4, atol=1e-4)

    # --- bf16 matmul operands (v6e/v7x fast path), f32 accumulation/epilogue ---
    out_bf16 = conv_bn_leakyrelu(x, weight, conv_bias, gamma, beta, run_mean,
                                 run_var, padding=1, stride=1,
                                 compute_dtype=jnp.bfloat16)
    out_bf16 = jax.block_until_ready(out_bf16)
    np.testing.assert_allclose(np.asarray(out_bf16), np.asarray(ref),
                               rtol=5e-2, atol=5e-2)

    # --- stride=2 path (stride handled in the wrapper im2col, not in-kernel) ---
    ref_s2 = _reference(x, weight, conv_bias, gamma, beta, run_mean, run_var,
                        padding=1, stride=2)
    out_s2 = conv_bn_leakyrelu(x, weight, conv_bias, gamma, beta, run_mean,
                               run_var, padding=1, stride=2,
                               compute_dtype=jnp.float32)
    out_s2 = jax.block_until_ready(out_s2)
    np.testing.assert_allclose(np.asarray(out_s2), np.asarray(ref_s2),
                               rtol=1e-4, atol=1e-4)

    print("KERNEL_OK")
</pallas_src>

<mosaic_0001>
module attributes {stable_mosaic.version = 11 : i64} {
  func.func @_matmul_bn_lrelu_kernel(%arg0: i32, %arg1: memref<256x128xf32, #tpu.memory_space<vmem>>, %arg2: memref<128x128xf32, #tpu.memory_space<vmem>>, %arg3: memref<1x8xf32, #tpu.memory_space<vmem>>, %arg4: memref<1x8xf32, #tpu.memory_space<vmem>>, %arg5: memref<256x8xf32, #tpu.memory_space<vmem>>) attributes {dimension_semantics = [#tpu.dimension_semantics<parallel>], iteration_bounds = array<i64: 2>, scalar_prefetch = 0 : i64, scratch_operands = 0 : i64, tpu.core_type = #tpu.core_type<tc>, window_params = [{transform_indices = @transform_0, window_bounds = array<i64: 256, 128>}, {pipeline_mode = #tpu.pipeline_mode<synchronous>, transform_indices = @transform_1, window_bounds = array<i64: 128, 128>}, {pipeline_mode = #tpu.pipeline_mode<synchronous>, transform_indices = @transform_2, window_bounds = array<i64: 1, 8>}, {pipeline_mode = #tpu.pipeline_mode<synchronous>, transform_indices = @transform_3, window_bounds = array<i64: 1, 8>}, {transform_indices = @transform_4, window_bounds = array<i64: 256, 8>}]} {
    %c0 = arith.constant 0 : index
    %c0_0 = arith.constant 0 : index
    %0 = vector.load %arg1[%c0, %c0_0] : memref<256x128xf32, #tpu.memory_space<vmem>>, vector<256x128xf32>
    %c0_1 = arith.constant 0 : index
    %c0_2 = arith.constant 0 : index
    %1 = vector.load %arg2[%c0_1, %c0_2] : memref<128x128xf32, #tpu.memory_space<vmem>>, vector<128x128xf32>
    %cst = arith.constant dense<0.000000e+00> : vector<256x128xf32>
    %2 = tpu.matmul %0, %1, %cst {dimension_numbers = #tpu.dot_dimension_numbers<[1], [0], [0], [1], [0, 0, 1, 1], [], []>} : vector<256x128xf32>, vector<128x128xf32>, vector<256x128xf32> -> vector<256x128xf32>
    %3 = vector.extract_strided_slice %2 {offsets = [0, 0], sizes = [256, 8], strides = [1, 1]} : vector<256x128xf32> to vector<256x8xf32>
    %c0_3 = arith.constant 0 : index
    %c0_4 = arith.constant 0 : index
    %4 = vector.load %arg3[%c0_3, %c0_4] : memref<1x8xf32, #tpu.memory_space<vmem>>, vector<1x8xf32>
    %5 = vector.broadcast %4 : vector<1x8xf32> to vector<256x8xf32>
    %6 = arith.mulf %3, %5 : vector<256x8xf32>
    %c0_5 = arith.constant 0 : index
    %c0_6 = arith.constant 0 : index
    %7 = vector.load %arg4[%c0_5, %c0_6] : memref<1x8xf32, #tpu.memory_space<vmem>>, vector<1x8xf32>
    %8 = vector.broadcast %7 : vector<1x8xf32> to vector<256x8xf32>
    %9 = arith.addf %6, %8 : vector<256x8xf32>
    %cst_7 = arith.constant 0.000000e+00 : f32
    %10 = vector.broadcast %cst_7 : f32 to vector<256x8xf32>
    %11 = arith.cmpf ogt, %9, %10 : vector<256x8xf32>
    %cst_8 = arith.constant 1.000000e-01 : f32
    %12 = vector.broadcast %cst_8 : f32 to vector<256x8xf32>
    %13 = arith.mulf %12, %9 : vector<256x8xf32>
    %14 = arith.select %11, %9, %13 : vector<256x8xi1>, vector<256x8xf32>
    %c0_9 = arith.constant 0 : index
    %c0_10 = arith.constant 0 : index
    %15 = vector.load %arg5[%c0_9, %c0_10] : memref<256x8xf32, #tpu.memory_space<vmem>>, vector<256x8xf32>
    tpu.vector_store %arg5[%c0_9, %c0_10], %14 {strides = array<i32>} : memref<256x8xf32, #tpu.memory_space<vmem>>, vector<256x8xf32>,
    return
  }
  func.func @transform_0(%arg0: i32) -> (i32, i32) {
    %c0_i32 = arith.constant 0 : i32
    %c0_i32_0 = arith.constant 0 : i32
    return %arg0, %c0_i32 : i32, i32
  }
  func.func @transform_1(%arg0: i32) -> (i32, i32) {
    %c0_i32 = arith.constant 0 : i32
    %c0_i32_0 = arith.constant 0 : i32
    %c0_i32_1 = arith.constant 0 : i32
    return %c0_i32, %c0_i32_0 : i32, i32
  }
  func.func @transform_2(%arg0: i32) -> (i32, i32) {
    %c0_i32 = arith.constant 0 : i32
    %c0_i32_0 = arith.constant 0 : i32
    %c0_i32_1 = arith.constant 0 : i32
    return %c0_i32, %c0_i32_0 : i32, i32
  }
  func.func @transform_3(%arg0: i32) -> (i32, i32) {
    %c0_i32 = arith.constant 0 : i32
    %c0_i32_0 = arith.constant 0 : i32
    %c0_i32_1 = arith.constant 0 : i32
    return %c0_i32, %c0_i32_0 : i32, i32
  }
  func.func @transform_4(%arg0: i32) -> (i32, i32) {
    %c0_i32 = arith.constant 0 : i32
    %c0_i32_0 = arith.constant 0 : i32
    return %arg0, %c0_i32 : i32, i32
  }
}

</mosaic_0001>

<bundles_post_ra>
// kernel: tpu_custom_call.1
= control target key start
LH: loop header
LB: loop body
LE: loop exit
PB: predicated region body
PF: predicated region fallthrough
CT: control target
= control target key end

     0   :  { %9 = vsyncpa [#allocation3], 0  ;;  %s1490_s0 = inlined_call_operand.hbm [shape: f32[512,128], index: 0, kind: input, shape index: {}]   ;;  %s1491_s1 = inlined_call_operand.hbm [shape: f32[128,128], index: 1, kind: input, shape index: {}]   ;;  %s1492_s2 = inlined_call_operand.vmem [shape: f32[1,8], index: 2, kind: input, shape index: {}]   ;;  %s1493_s3 = inlined_call_operand.vmem [shape: f32[1,8], index: 3, kind: input, shape index: {}]   ;;  %s1494_s4 = inlined_call_operand.vmem [shape: f32[512,8], index: 4, kind: output, shape index: {}]  }
   0x1   :  { %11 = vsyncpa [#allocation3 + $0x1], 0 }
   0x2   :  { %12 = vsyncpa [#allocation5], 0  ;;  %s1165_s15 = smov 0   ;;  %s1167_s16 = smov 0  }
   0x3   :  { %s1169_s17 = smov 0   ;;  %s1171_s18 = smov 0  }
   0x4 LB: > { %s792_s19 = sadd.s32 4294967295, %s1134_s18   ;;  %p38_p0 = scmp.ne.s32.totalorder %s1126_s16, %s1122_s15  ;;  %s1134_s18 = sphi %s1171_s18, %s1511_s18   ;;  %s1130_s17 = sphi %s1169_s17, %s1510_s17   ;;  %s1126_s16 = sphi %s1167_s16, %s1509_s16   ;;  %s1122_s15 = sphi %s1165_s15, %s1508_s15  }
   0x5   : > { %p1187_p1 = scmp.eq.s32.totalorder %s792_s19, 0  ;;  %p794_p2 = scmp.ge.s32.totalorder %s1134_s18, 1 }
   0x6   : > { %p138_p3 = scmp.lt.s32.totalorder %s1134_s18, 3  ;;  %s1136_s23 = smov [#allocation4]  }
   0x7   : > { %s1499_s20 = scalar_select %p1187_p1, 1, 0 }
   0x8   : > { %p1195_p4 = por %p1187_p1, %p38_p0  ;;  %p1199_p5 = pnand %p794_p2, %p138_p3 }
   0x9   : > { %s150_s24 = sshll.u32 %s1136_s23, 4  ;;  %s1212_s26 = sadd.s32 1, %s1134_s18   ;;  %s151_s24 = int_to_ptr.vmem [resolvable:$true] %s150_s24 }
   0xa   : > { %s1500_s21 = scalar_select %p1195_p4, 1, 0 }
   0xb   : > { %s1501_s22 = scalar_select %p1199_p5, 1, 0 }
   0xc   : > { %p992_p6 = pneg %p1199_p5  ;;  %s25_s27 = sadd.s32 1, %s1130_s17 }
   0xd   : > { %s22_s28 = ssub.s32 %s1134_s18, %s1212_s26  ;;  %s1038_s5 = scalar_lea.hbm %s1491_s1, 2048 }
   0xe   : > { %p1207_p7 = pnand %p992_p6, %p1187_p1  ;;  %p1039_p8 = scmp.ne.s32.totalorder %s1491_s1, %s1038_s5 }
   0xf   : > { %p1045_p12 = scmp.lt.u32.totalorder %s1038_s5, %s1491_s1 }
  0x10   : > { %p1040_p9 = pneg %p1207_p7 }
  0x12   : > { %p1041_p10 = pnand %p1040_p9, %p1039_p8 }
  0x14   : > { %p1042_p11 = pneg %p1041_p10 }
  0x16   : > { %p1047_p13 = pnand %p1045_p12, %p1042_p11 }
  0x18   : > { %1050 = shalt.err (!%p1047_p13)
}
  0x19   : > { %s1051_s10 = scalar_lea.vmem %s151_s24, 2048  ;;  %p1059_p6 = scmp.lt.s32.totalorder %s151_s24, %s151_s24 }
  0x1a   : > { %p1052_p0 = scmp.ne.s32.totalorder %s151_s24, %s1051_s10  ;;  %p1060_p1 = scmp.lt.s32.totalorder %s1051_s10, %s1051_s10 }
  0x1c   : > { %p1054_p2 = pnand %p1052_p0, %p1040_p9  ;;  %p1061_p4 = por %p1060_p1, %p1059_p6 }
  0x1e   : > { %p1055_p3 = pneg %p1054_p2 }
  0x20   : > { %p1062_p5 = pnand %p1061_p4, %p1055_p3 }
  0x22   : > { %1065 = shalt.err (!%p1062_p5)
}
  0x23   : > { %s1137_s11 = smov 128   ;;  %s1138_s12 = smov 8  }
  0x24   : > { %995 = dma.hbm_to_vmem [thread:$0]  (!%p1207_p7), %s1491_s1, 2048, %s151_s24, [#allocation5], %s1137_s11, %s1137_s11, %s1138_s12  }
  0x25   : > { %p23_p1 = scmp.eq.s32.totalorder %s22_s28, 0  ;;  %p32_p4 = scmp.ne.s32.totalorder %s1130_s17, %s1126_s16 }
  0x26   : > { %p33_p5 = scmp.eq.s32.totalorder %s1134_s18, 0  ;;  %p1001_p8 = scmp.lt.s32.totalorder %s1134_s18, 2 }
  0x27   : > { %s1241_s15 = scalar_select %p23_p1, %s1130_s17, %s25_s27  }
  0x28   : > { %p34_p9 = por %p33_p5, %p32_p4  ;;  %s170_s23 = sand.u32 1, %s1130_s17  }
  0x29   : > { %s797_s29 = sshll.u32 %s170_s23, 8  ;;  %s809_s30 = sshll.u32 %s1134_s18, 12 }
  0x2a   : > { %s1248_s25 = scalar_lea.hbm %s1490_s0, %s809_s30  ;;  %s174_s24 = scalar_lea.vmem [#allocation2], %s797_s29 }
  0x2b   : > { %s181_s28 = sshll.u32 %s174_s24, 4  ;;  %p1252_p7 = pnand %p1001_p8, %p34_p9  ;;  %s1250_s28 = int_to_ptr.vmem [resolvable:$true] %s181_s28 }
  0x2c   : > { %s1256_s7 = scalar_lea.sflag [#allocation3], %s170_s23  ;;  %s1066_s8 = scalar_lea.hbm %s1248_s25, 4096 }
  0x2d   : > { %p1067_p10 = scmp.ne.s32.totalorder %s1248_s25, %s1066_s8  ;;  %p1068_p11 = pneg %p1252_p7 }
  0x2e   : > { %s1071_s13 = scalar_lea.hbm %s1490_s0, 8192  ;;  %p1072_p0 = scmp.lt.u32.totalorder %s1248_s25, %s1490_s0 }
  0x2f   : > { %p1069_p12 = pnand %p1068_p11, %p1067_p10  ;;  %p1073_p2 = scmp.lt.u32.totalorder %s1071_s13, %s1066_s8 }
  0x30   : > { %p1075_p6 = scmp.lt.u32.totalorder %s1066_s8, %s1248_s25 }
  0x31   : > { %p1070_p13 = pneg %p1069_p12  ;;  %p1074_p3 = por %p1073_p2, %p1072_p0 }
  0x33   : > { %p1076_p1 = por %p1075_p6, %p1074_p3 }
  0x35   : > { %p1077_p4 = pnand %p1076_p1, %p1070_p13 }
  0x37   : > { %1080 = shalt.err (!%p1077_p4)
}
  0x38   : > { %s1081_s23 = scalar_lea.vmem %s1250_s28, 4096  ;;  %s1139_s30 = smov [#allocation2]  }
  0x39   : > { %p1082_p5 = scmp.ne.s32.totalorder %s1250_s28, %s1081_s23  ;;  %s1086_s5 = sshll.u32 %s1139_s30, 4  ;;  %s1087_s5 = int_to_ptr.vmem [resolvable:$false] %s1086_s5 }
  0x3a   : > { %s1088_s6 = scalar_lea.vmem %s1087_s5, 8192  ;;  %p1089_p10 = scmp.lt.s32.totalorder %s1250_s28, %s1087_s5 }
  0x3b   : > { %p1084_p8 = pnand %p1082_p5, %p1068_p11  ;;  %p1090_p12 = scmp.lt.s32.totalorder %s1088_s6, %s1081_s23 }
  0x3d   : > { %p1085_p9 = pneg %p1084_p8  ;;  %p1091_p0 = por %p1090_p12, %p1089_p10 }
  0x3f   : > { %p1092_p2 = pnand %p1091_p0, %p1085_p9 }
  0x41   : > { %1095 = shalt.err (!%p1092_p2)
}
  0x42   : > { %999 = dma.hbm_to_vmem [thread:$0]  (!%p1252_p7), %s1248_s25, 4096, %s1250_s28, %s1256_s7, %s1137_s11, %s1137_s11, %s1138_s12  }
  0x43   : > { %p1504_p11 = scmp.ne.s32.totalorder %s1501_s22, 0 }
  0x44   : > { %s195_s24 = sand.u32 (!%p1504_p11), 1, %s1126_s16   ;;  %p1505_p13 = scmp.ne.s32.totalorder (!%p1504_p11), %s1500_s21, 0 }
  0x45   : > { %193 = sbr.rel (%p1504_p11) target bundleno = 373 (0x175), region = 36  ;;  %s801_s8 = sshll.u32 (!%p1504_p11), %s195_s24, 8 }
  0x46   : > { %s196_s9 = scalar_lea.sflag (!%p1504_p11), [#allocation3], %s195_s24  ;;  %s1290_s10 = scalar_lea.vmem (!%p1504_p11), [#allocation2], %s801_s8 }
  0x4c   : > { %1113 = dma.done.wait (%p1505_p13), %s196_s9, 4096  }
  0x4d   : > { %1115 = vsyncadd (%p1505_p13), %s196_s9, 4294963200  ;;  %p1506_p3 = scmp.ne.s32.totalorder %s1499_s20, 0 }
  0x4f   : > { %1117 = dma.done.wait (%p1506_p3), [#allocation5], 2048  }
  0x50   : > { %1119 = vsyncadd (%p1506_p3), [#allocation5], 4294965248  ;;  %v267_v0 = vld [vmem:[#allocation4] sm:$0xff]  ;;  %v268_v1 = vld [vmem:[#allocation4 + $0x8] sm:$0xff]  ;;  %s803_s20 = sshll.u32 %s792_s19, 5  ;;  %vm682_vm0 = vcmask 64512  }
  0x51   : > { %v269_v2 = vld [vmem:[#allocation4 + $0x10] sm:$0xff]  ;;  %v938_v3 = vpack.c.bf16 %v268_v1, %v267_v0  ;;  %v270_v4 = vld [vmem:[#allocation4 + $0x18] sm:$0xff]  ;;  %v271_v6 = vld [vmem:[#allocation4 + $0x20] sm:$0xff]  ;;  %p230_p7 = scmp.lt.s32.totalorder %s803_s20, 63 }
  0x52   : > { %v942_v5 = vpack.c.bf16 %v270_v4, %v269_v2  ;;  %v272_v7 = vld [vmem:[#allocation4 + $0x28] sm:$0xff]  ;;  %v235_v9 = vld [vmem:[%s1290_s10] sm:$0xff]  ;;  %v273_v11 = vld [vmem:[#allocation4 + $0x30] sm:$0xff] }
  0x53   : > { %939 = vmatprep.subr.bf16.mxu0 %v938_v3  ;;  %970 = vmatprep.subr.bf16.mxu1 %v938_v3  ;;  %v946_v8 = vpack.c.bf16 %v272_v7, %v271_v6  ;;  %v251_v10 = vld [vmem:[%s1290_s10 + $0x80] sm:$0xff]  ;;  %v274_v12 = vld [vmem:[#allocation4 + $0x38] sm:$0xff]  ;;  %v276_v15 = vld [vmem:[#allocation4 + $0x48] sm:$0xff]  ;;  %s1513_s20 = smov (!%p230_p7, %s803_s20), 63 }
  0x54   : > { %941 = vmatpush3.bf16.msra.mxu0 %v938_v3  ;;  %978 = vmatpush3.bf16.msra.mxu1 %v938_v3  ;;  %v950_v13 = vpack.c.bf16 %v274_v12, %v273_v11  ;;  %v275_v14 = vld [vmem:[#allocation4 + $0x40] sm:$0xff]  ;;  %v277_v17 = vld [vmem:[#allocation4 + $0x50] sm:$0xff]  ;;  %v278_v18 = vld [vmem:[#allocation4 + $0x58] sm:$0xff]  ;;  %s804_s18 = sshll.u32 %s1513_s20, 3 }
  0x55   : > { %943 = vmatprep.subr.bf16.mxu0 %v942_v5  ;;  %971 = vmatprep.subr.bf16.mxu1 %v942_v5  ;;  %v954_v16 = vpack.c.bf16 %v276_v15, %v275_v14  ;;  %v958_v19 = vpack.c.bf16 %v278_v18, %v277_v17  ;;  %v279_v20 = vld [vmem:[#allocation4 + $0x60] sm:$0xff]  ;;  %v280_v21 = vld [vmem:[#allocation4 + $0x68] sm:$0xff]  ;;  %v281_v23 = vld [vmem:[#allocation4 + $0x70] sm:$0xff]  ;;  %s1355_s28 = scalar_lea.vmem %s1494_s4, %s804_s18 }
  0x56   : > { %890 = vmatprep.mubr.f32.mxu0 %v235_v9  ;;  %914 = vmatprep.mubr.f32.mxu1 %v251_v10  ;;  %v962_v22 = vpack.c.bf16 %v280_v21, %v279_v20  ;;  %v282_v24 = vld [vmem:[#allocation4 + $0x78] sm:$0xff]  ;;  %v236_v26 = vld [vmem:[%s1290_s10 + $0x8] sm:$0xff]  ;;  %v237_v28 = vld [vmem:[%s1290_s10 + $0x10] sm:$0xff] }
  0x57   : > { %v966_v25 = vpack.c.bf16 %v282_v24, %v281_v23  ;;  %v252_v27 = vld [vmem:[%s1290_s10 + $0x88] sm:$0xff]  ;;  %v253_v29 = vld [vmem:[%s1290_s10 + $0x90] sm:$0xff]  ;;  %v238_v30 = vld [vmem:[%s1290_s10 + $0x18] sm:$0xff] }
  0x58   : > { %945 = vmatpush3.bf16.msra.mxu0 %v942_v5  ;;  %979 = vmatpush3.bf16.msra.mxu1 %v942_v5  ;;  %v254_v31 = vld [vmem:[%s1290_s10 + $0x98] sm:$0xff]  ;;  %v239_v32 = vld [vmem:[%s1290_s10 + $0x20] sm:$0xff]  ;;  %v240_v34 = vld [vmem:[%s1290_s10 + $0x28] sm:$0xff] }
  0x59   : > { %947 = vmatprep.subr.bf16.mxu0 %v946_v8  ;;  %972 = vmatprep.subr.bf16.mxu1 %v946_v8  ;;  %v255_v33 = vld [vmem:[%s1290_s10 + $0xa0] sm:$0xff]  ;;  %v256_v35 = vld [vmem:[%s1290_s10 + $0xa8] sm:$0xff]  ;;  %v241_v36 = vld [vmem:[%s1290_s10 + $0x30] sm:$0xff] }
  0x5a   : > { %v257_v37 = vld [vmem:[%s1290_s10 + $0xb0] sm:$0xff]  ;;  %v242_v38 = vld [vmem:[%s1290_s10 + $0x38] sm:$0xff]  ;;  %v243_v40 = vld [vmem:[%s1290_s10 + $0x40] sm:$0xff] }
  0x5b   : > { %v258_v39 = vld [vmem:[%s1290_s10 + $0xb8] sm:$0xff]  ;;  %v259_v41 = vld [vmem:[%s1290_s10 + $0xc0] sm:$0xff]  ;;  %v244_v42 = vld [vmem:[%s1290_s10 + $0x48] sm:$0xff] }
  0x5c   : > { %949 = vmatpush3.bf16.msra.mxu0 %v946_v8  ;;  %980 = vmatpush3.bf16.msra.mxu1 %v946_v8  ;;  %v260_v43 = vld [vmem:[%s1290_s10 + $0xc8] sm:$0xff]  ;;  %v245_v44 = vld [vmem:[%s1290_s10 + $0x50] sm:$0xff]  ;;  %v246_v46 = vld [vmem:[%s1290_s10 + $0x58] sm:$0xff] }
  0x5d   : > { %951 = vmatprep.subr.bf16.mxu0 %v950_v13  ;;  %973 = vmatprep.subr.bf16.mxu1 %v950_v13  ;;  %v261_v45 = vld [vmem:[%s1290_s10 + $0xd0] sm:$0xff]  ;;  %v262_v47 = vld [vmem:[%s1290_s10 + $0xd8] sm:$0xff]  ;;  %v247_v48 = vld [vmem:[%s1290_s10 + $0x60] sm:$0xff] }
  0x5e   : > { %v263_v49 = vld [vmem:[%s1290_s10 + $0xe0] sm:$0xff]  ;;  %v248_v50 = vld [vmem:[%s1290_s10 + $0x68] sm:$0xff]  ;;  %v249_v52 = vld [vmem:[%s1290_s10 + $0x70] sm:$0xff] }
  0x5f   : > { %v264_v51 = vld [vmem:[%s1290_s10 + $0xe8] sm:$0xff]  ;;  %v265_v53 = vld [vmem:[%s1290_s10 + $0xf0] sm:$0xff]  ;;  %v250_v54 = vld [vmem:[%s1290_s10 + $0x78] sm:$0xff] }
  0x60   : > { %953 = vmatpush3.bf16.msra.mxu0 %v950_v13  ;;  %981 = vmatpush3.bf16.msra.mxu1 %v950_v13  ;;  %v266_v55 = vld [vmem:[%s1290_s10 + $0xf8] sm:$0xff]  ;;  %v1337_v56 = vld [vmem:[%s1492_s2] ss:$0 sm:$0xff] }
  0x61   : > { %955 = vmatprep.subr.bf16.mxu0 %v954_v16  ;;  %974 = vmatprep.subr.bf16.mxu1 %v954_v16  ;;  %v1342_v58 = vld [vmem:[%s1493_s3] ss:$0 sm:$0xff] }
  0x64   : > { %957 = vmatpush3.bf16.msra.mxu0 %v954_v16  ;;  %982 = vmatpush3.bf16.msra.mxu1 %v954_v16 }
  0x65   : > { %959 = vmatprep.subr.bf16.mxu0 %v958_v19  ;;  %975 = vmatprep.subr.bf16.mxu1 %v958_v19 }
  0x68   : > { %961 = vmatpush3.bf16.msra.mxu0 %v958_v19  ;;  %983 = vmatpush3.bf16.msra.mxu1 %v958_v19 }
  0x69   : > { %963 = vmatprep.subr.bf16.mxu0 %v962_v22  ;;  %976 = vmatprep.subr.bf16.mxu1 %v962_v22 }
  0x6c   : > { %965 = vmatpush3.bf16.msra.mxu0 %v962_v22  ;;  %984 = vmatpush3.bf16.msra.mxu1 %v962_v22 }
  0x6d   : > { %967 = vmatprep.subr.bf16.mxu0 %v966_v25  ;;  %977 = vmatprep.subr.bf16.mxu1 %v966_v25 }
  0x70   : > { %969 = vmatpush3.bf16.msra.mxu0 %v966_v25  ;;  %985 = vmatpush3.bf16.msra.mxu1 %v966_v25 }
  0x73   : > { %891 = vmatmul.mubr.f32.vlgmr.msra.gmra.mrb[0].mxu0 %v236_v26  ;;  %915 = vmatmul.mubr.f32.vlgmr.msra.gmra.mrb[0].mxu1 %v252_v27 }
  0x74   : > { %893 = vmatprep.mubr.f32.mxu0 %v237_v28  ;;  %917 = vmatprep.mubr.f32.mxu1 %v253_v29 }
  0x77   : > { %894 = vmatmul.mubr.f32.gmra.mrb[2].mxu0 %v238_v30  ;;  %918 = vmatmul.mubr.f32.gmra.mrb[2].mxu1 %v254_v31 }
  0x78   : > { %896 = vmatprep.mubr.f32.mxu0 %v239_v32  ;;  %920 = vmatprep.mubr.f32.mxu1 %v255_v33 }
  0x7b   : > { %897 = vmatmul.mubr.f32.gmra.mrb[4].mxu0 %v240_v34  ;;  %921 = vmatmul.mubr.f32.gmra.mrb[4].mxu1 %v256_v35 }
  0x7c   : > { %899 = vmatprep.mubr.f32.mxu0 %v241_v36  ;;  %923 = vmatprep.mubr.f32.mxu1 %v257_v37 }
  0x7f   : > { %900 = vmatmul.mubr.f32.gmra.mrb[6].mxu0 %v242_v38  ;;  %924 = vmatmul.mubr.f32.gmra.mrb[6].mxu1 %v258_v39 }
  0x80   : > { %902 = vmatprep.mubr.f32.mxu0 %v243_v40  ;;  %926 = vmatprep.mubr.f32.mxu1 %v259_v41 }
  0x83   : > { %903 = vmatmul.mubr.f32.gmra.mrb[8].mxu0 %v244_v42  ;;  %927 = vmatmul.mubr.f32.gmra.mrb[8].mxu1 %v260_v43 }
  0x84   : > { %905 = vmatprep.mubr.f32.mxu0 %v245_v44  ;;  %929 = vmatprep.mubr.f32.mxu1 %v261_v45 }
  0x87   : > { %906 = vmatmul.mubr.f32.gmra.mrb[10].mxu0 %v246_v46  ;;  %930 = vmatmul.mubr.f32.gmra.mrb[10].mxu1 %v262_v47 }
  0x88   : > { %908 = vmatprep.mubr.f32.mxu0 %v247_v48  ;;  %932 = vmatprep.mubr.f32.mxu1 %v263_v49 }
  0x8b   : > { %909 = vmatmul.mubr.f32.gmra.mrb[12].mxu0 %v248_v50  ;;  %933 = vmatmul.mubr.f32.gmra.mrb[12].mxu1 %v264_v51 }
  0x8c   : > { %911 = vmatprep.mubr.f32.mxu0 %v249_v52  ;;  %935 = vmatprep.mubr.f32.mxu1 %v265_v53 }
  0x8f   : > { %912 = vmatmul.mubr.f32.gmra.mrb[14].mxu0 %v250_v54  ;;  %936 = vmatmul.mubr.f32.gmra.mrb[14].mxu1 %v266_v55 }
 0x146   : > { %v892_v57 = vpop.f32.mrb[0].mxu0  ;;  %v916_v59 = vpop.f32.mrb[0].mxu1 }
 0x147   : > { %v516_v60 = vmul.f32 %v892_v57, %v1337_v56  ;;  %v532_v61 = vmul.f32 %v916_v59, %v1337_v56  ;;  %v349_v62 = vpop.f32.mrb[1].mxu0  ;;  %v429_v63 = vpop.f32.mrb[1].mxu1 }
 0x148   : > { %v515_v0 = vmul.f32 %v1337_v56, %v349_v62  ;;  %v531_v1 = vmul.f32 %v1337_v56, %v429_v63 }
 0x149   : > { %v555_v2 = vadd.f32 %v1342_v58, %v516_v60  ;;  %v571_v3 = vadd.f32 %v1342_v58, %v532_v61 }
 0x14a   : > { %v554_v4 = vadd.f32 %v1342_v58, %v515_v0  ;;  %v570_v5 = vadd.f32 %v1342_v58, %v531_v1  ;;  %v895_v6 = vpop.f32.mrb[2].mxu0  ;;  %v919_v7 = vpop.f32.mrb[2].mxu1 }
 0x14b   : > { %vm587_vm1 = vcmp.gt.f32.partialorder %v555_v2, 0.0  ;;  %v619_v8 = vmul.f32 0.1, %v555_v2  ;;  %vm603_vm2 = vcmp.gt.f32.partialorder %v571_v3, 0.0  ;;  %v635_v9 = vmul.f32 0.1, %v571_v3 }
 0x14c   : > { %vm586_vm3 = vcmp.gt.f32.partialorder %v554_v4, 0.0  ;;  %v618_v10 = vmul.f32 0.1, %v554_v4  ;;  %vm602_vm4 = vcmp.gt.f32.partialorder %v570_v5, 0.0  ;;  %v634_v11 = vmul.f32 0.1, %v570_v5 }
 0x14d   : > { %v651_v12 = vsel %vm587_vm1, %v555_v2, %v619_v8  ;;  %v667_v13 = vsel %vm603_vm2, %v571_v3, %v635_v9  ;;  %v518_v14 = vmul.f32 %v895_v6, %v1337_v56  ;;  %v534_v15 = vmul.f32 %v919_v7, %v1337_v56  ;;  %v359_v16 = vpop.f32.mrb[3].mxu0  ;;  %v439_v17 = vpop.f32.mrb[3].mxu1 }
 0x14e   : > { %684 = vst.msk [vmem:[%s1355_s28 + $0x8] sm:$0xff] %vm682_vm0, %v651_v12  ;;  %700 = vst.msk [vmem:[%s1355_s28 + $0x88] sm:$0xff] %vm682_vm0, %v667_v13  ;;  %v650_v18 = vsel %vm586_vm3, %v554_v4, %v618_v10  ;;  %v666_v19 = vsel %vm602_vm4, %v570_v5, %v634_v11  ;;  %v517_v20 = vmul.f32 %v1337_v56, %v359_v16  ;;  %v898_v22 = vpop.f32.mrb[4].mxu0  ;;  %v922_v23 = vpop.f32.mrb[4].mxu1 }
 0x14f   : > { %v533_v21 = vmul.f32 %v1337_v56, %v439_v17  ;;  %683 = vst.msk [vmem:[%s1355_s28] sm:$0xff] %vm682_vm0, %v650_v18  ;;  %699 = vst.msk [vmem:[%s1355_s28 + $0x80] sm:$0xff] %vm682_vm0, %v666_v19  ;;  %v557_v24 = vadd.f32 %v1342_v58, %v518_v14  ;;  %v573_v25 = vadd.f32 %v1342_v58, %v534_v15  ;;  %v369_v28 = vpop.f32.mrb[5].mxu0  ;;  %v449_v29 = vpop.f32.mrb[5].mxu1 }
 0x150   : > { %v520_v26 = vmul.f32 %v898_v22, %v1337_v56  ;;  %v536_v27 = vmul.f32 %v922_v23, %v1337_v56  ;;  %v556_v30 = vadd.f32 %v1342_v58, %v517_v20  ;;  %v519_v32 = vmul.f32 %v1337_v56, %v369_v28 }
 0x151   : > { %v572_v31 = vadd.f32 %v1342_v58, %v533_v21  ;;  %v535_v33 = vmul.f32 %v1337_v56, %v449_v29  ;;  %vm589_vm5 = vcmp.gt.f32.partialorder %v557_v24, 0.0  ;;  %v621_v34 = vmul.f32 0.1, %v557_v24 }
 0x152   : > { %vm605_vm6 = vcmp.gt.f32.partialorder %v573_v25, 0.0  ;;  %v637_v35 = vmul.f32 0.1, %v573_v25  ;;  %vm588_vm7 = vcmp.gt.f32.partialorder %v556_v30, 0.0  ;;  %v620_v36 = vmul.f32 0.1, %v556_v30 }
 0x153   : > { %vm604_vm8 = vcmp.gt.f32.partialorder %v572_v31, 0.0  ;;  %v636_v37 = vmul.f32 0.1, %v572_v31  ;;  %v653_v38 = vsel %vm589_vm5, %v557_v24, %v621_v34  ;;  %v559_v40 = vadd.f32 %v1342_v58, %v520_v26  ;;  %v901_v42 = vpop.f32.mrb[6].mxu0  ;;  %v925_v43 = vpop.f32.mrb[6].mxu1 }
 0x154   : > { %v669_v39 = vsel %vm605_vm6, %v573_v25, %v637_v35  ;;  %v575_v41 = vadd.f32 %v1342_v58, %v536_v27  ;;  %686 = vst.msk [vmem:[%s1355_s28 + $0x18] sm:$0xff] %vm682_vm0, %v653_v38  ;;  %v652_v44 = vsel %vm588_vm7, %v556_v30, %v620_v36  ;;  %v558_v46 = vadd.f32 %v1342_v58, %v519_v32  ;;  %v379_v48 = vpop.f32.mrb[7].mxu0  ;;  %v459_v49 = vpop.f32.mrb[7].mxu1 }
 0x155   : > { %702 = vst.msk [vmem:[%s1355_s28 + $0x98] sm:$0xff] %vm682_vm0, %v669_v39  ;;  %v668_v45 = vsel %vm604_vm8, %v572_v31, %v636_v37  ;;  %v574_v47 = vadd.f32 %v1342_v58, %v535_v33  ;;  %685 = vst.msk [vmem:[%s1355_s28 + $0x10] sm:$0xff] %vm682_vm0, %v652_v44  ;;  %vm591_vm9 = vcmp.gt.f32.partialorder %v559_v40, 0.0  ;;  %v623_v50 = vmul.f32 0.1, %v559_v40 }
 0x156   : > { %701 = vst.msk [vmem:[%s1355_s28 + $0x90] sm:$0xff] %vm682_vm0, %v668_v45  ;;  %vm607_vm10 = vcmp.gt.f32.partialorder %v575_v41, 0.0  ;;  %v639_v51 = vmul.f32 0.1, %v575_v41  ;;  %vm590_vm11 = vcmp.gt.f32.partialorder %v558_v46, 0.0  ;;  %v522_v57 = vmul.f32 %v901_v42, %v1337_v56  ;;  %v904_v60 = vpop.f32.mrb[8].mxu0 }
 0x157   : > { %v622_v52 = vmul.f32 0.1, %v558_v46  ;;  %vm606_vm12 = vcmp.gt.f32.partialorder %v574_v47, 0.0  ;;  %v638_v53 = vmul.f32 0.1, %v574_v47  ;;  %v655_v54 = vsel %vm591_vm9, %v559_v40, %v623_v50  ;;  %v928_v61 = vpop.f32.mrb[8].mxu1 }
 0x158   : > { %v671_v55 = vsel %vm607_vm10, %v575_v41, %v639_v51  ;;  %v538_v59 = vmul.f32 %v925_v43, %v1337_v56  ;;  %688 = vst.msk [vmem:[%s1355_s28 + $0x28] sm:$0xff] %vm682_vm0, %v655_v54  ;;  %v521_v0 = vmul.f32 %v1337_v56, %v379_v48  ;;  %v537_v1 = vmul.f32 %v1337_v56, %v459_v49  ;;  %v389_v2 = vpop.f32.mrb[9].mxu0  ;;  %v469_v3 = vpop.f32.mrb[9].mxu1 }
 0x159   : > { %704 = vst.msk [vmem:[%s1355_s28 + $0xa8] sm:$0xff] %vm682_vm0, %v671_v55  ;;  %v654_v62 = vsel %vm590_vm11, %v558_v46, %v622_v52  ;;  %v670_v63 = vsel %vm606_vm12, %v574_v47, %v638_v53  ;;  %v561_v4 = vadd.f32 %v1342_v58, %v522_v57  ;;  %v524_v6 = vmul.f32 %v904_v60, %v1337_v56 }
 0x15a   : > { %687 = vst.msk [vmem:[%s1355_s28 + $0x20] sm:$0xff] %vm682_vm0, %v654_v62  ;;  %703 = vst.msk [vmem:[%s1355_s28 + $0xa0] sm:$0xff] %vm682_vm0, %v670_v63  ;;  %v577_v5 = vadd.f32 %v1342_v58, %v538_v59  ;;  %v540_v7 = vmul.f32 %v928_v61, %v1337_v56  ;;  %v560_v8 = vadd.f32 %v1342_v58, %v521_v0  ;;  %v907_v12 = vpop.f32.mrb[10].mxu0  ;;  %v931_v13 = vpop.f32.mrb[10].mxu1 }
 0x15b   : > { %v576_v9 = vadd.f32 %v1342_v58, %v537_v1  ;;  %v523_v10 = vmul.f32 %v1337_v56, %v389_v2  ;;  %v539_v11 = vmul.f32 %v1337_v56, %v469_v3  ;;  %vm593_vm13 = vcmp.gt.f32.partialorder %v561_v4, 0.0  ;;  %v399_v22 = vpop.f32.mrb[11].mxu0  ;;  %v479_v23 = vpop.f32.mrb[11].mxu1 }
 0x15c   : > { %v625_v14 = vmul.f32 0.1, %v561_v4  ;;  %vm609_vm14 = vcmp.gt.f32.partialorder %v577_v5, 0.0  ;;  %v641_v15 = vmul.f32 0.1, %v577_v5  ;;  %vm592_vm15 = vcmp.gt.f32.partialorder %v560_v8, 0.0 }
 0x15d   : > { %v624_v16 = vmul.f32 0.1, %v560_v8  ;;  %vm608_vm1 = vcmp.gt.f32.partialorder %v576_v9, 0.0  ;;  %v640_v17 = vmul.f32 0.1, %v576_v9  ;;  %v563_v20 = vadd.f32 %v1342_v58, %v524_v6 }
 0x15e   : > { %v657_v18 = vsel %vm593_vm13, %v561_v4, %v625_v14  ;;  %v673_v19 = vsel %vm609_vm14, %v577_v5, %v641_v15  ;;  %v579_v21 = vadd.f32 %v1342_v58, %v540_v7  ;;  %v562_v26 = vadd.f32 %v1342_v58, %v523_v10  ;;  %v910_v28 = vpop.f32.mrb[12].mxu0  ;;  %v934_v29 = vpop.f32.mrb[12].mxu1 }
 0x15f   : > { %690 = vst.msk [vmem:[%s1355_s28 + $0x38] sm:$0xff] %vm682_vm0, %v657_v18  ;;  %706 = vst.msk [vmem:[%s1355_s28 + $0xb8] sm:$0xff] %vm682_vm0, %v673_v19  ;;  %v656_v24 = vsel %vm592_vm15, %v560_v8, %v624_v16  ;;  %v672_v25 = vsel %vm608_vm1, %v576_v9, %v640_v17  ;;  %v578_v27 = vadd.f32 %v1342_v58, %v539_v11  ;;  %vm595_vm2 = vcmp.gt.f32.partialorder %v563_v20, 0.0  ;;  %v409_v38 = vpop.f32.mrb[13].mxu0  ;;  %v489_v39 = vpop.f32.mrb[13].mxu1 }
 0x160   : > { %689 = vst.msk [vmem:[%s1355_s28 + $0x30] sm:$0xff] %vm682_vm0, %v656_v24  ;;  %705 = vst.msk [vmem:[%s1355_s28 + $0xb0] sm:$0xff] %vm682_vm0, %v672_v25  ;;  %v627_v30 = vmul.f32 0.1, %v563_v20  ;;  %vm611_vm3 = vcmp.gt.f32.partialorder %v579_v21, 0.0  ;;  %vm594_vm4 = vcmp.gt.f32.partialorder %v562_v26, 0.0  ;;  %v526_v36 = vmul.f32 %v907_v12, %v1337_v56 }
 0x161   : > { %v643_v31 = vmul.f32 0.1, %v579_v21  ;;  %v626_v32 = vmul.f32 0.1, %v562_v26  ;;  %vm610_vm5 = vcmp.gt.f32.partialorder %v578_v27, 0.0  ;;  %v542_v37 = vmul.f32 %v931_v13, %v1337_v56 }
 0x162   : > { %v642_v33 = vmul.f32 0.1, %v578_v27  ;;  %v659_v34 = vsel %vm595_vm2, %v563_v20, %v627_v30  ;;  %v525_v42 = vmul.f32 %v1337_v56, %v399_v22  ;;  %v541_v43 = vmul.f32 %v1337_v56, %v479_v23  ;;  %v913_v44 = vpop.f32.mrb[14].mxu0  ;;  %v937_v45 = vpop.f32.mrb[14].mxu1 }
 0x163   : > { %v675_v35 = vsel %vm611_vm3, %v579_v21, %v643_v31  ;;  %692 = vst.msk [vmem:[%s1355_s28 + $0x48] sm:$0xff] %vm682_vm0, %v659_v34  ;;  %v658_v40 = vsel %vm594_vm4, %v562_v26, %v626_v32  ;;  %v565_v46 = vadd.f32 %v1342_v58, %v526_v36  ;;  %v581_v47 = vadd.f32 %v1342_v58, %v542_v37  ;;  %v419_v50 = vpop.f32.mrb[15].mxu0  ;;  %v499_v51 = vpop.f32.mrb[15].mxu1 }
 0x164   : > { %708 = vst.msk [vmem:[%s1355_s28 + $0xc8] sm:$0xff] %vm682_vm0, %v675_v35  ;;  %v674_v41 = vsel %vm610_vm5, %v578_v27, %v642_v33  ;;  %691 = vst.msk [vmem:[%s1355_s28 + $0x40] sm:$0xff] %vm682_vm0, %v658_v40  ;;  %v528_v48 = vmul.f32 %v910_v28, %v1337_v56  ;;  %v544_v49 = vmul.f32 %v934_v29, %v1337_v56 }
 0x165   : > { %707 = vst.msk [vmem:[%s1355_s28 + $0xc0] sm:$0xff] %vm682_vm0, %v674_v41  ;;  %v564_v52 = vadd.f32 %v1342_v58, %v525_v42  ;;  %v580_v53 = vadd.f32 %v1342_v58, %v541_v43  ;;  %v527_v54 = vmul.f32 %v1337_v56, %v409_v38  ;;  %v543_v55 = vmul.f32 %v1337_v56, %v489_v39 }
 0x166   : > { %vm597_vm6 = vcmp.gt.f32.partialorder %v565_v46, 0.0  ;;  %v629_v57 = vmul.f32 0.1, %v565_v46  ;;  %vm613_vm7 = vcmp.gt.f32.partialorder %v581_v47, 0.0  ;;  %v645_v59 = vmul.f32 0.1, %v581_v47 }
 0x167   : > { %vm596_vm8 = vcmp.gt.f32.partialorder %v564_v52, 0.0  ;;  %v628_v60 = vmul.f32 0.1, %v564_v52  ;;  %vm612_vm9 = vcmp.gt.f32.partialorder %v580_v53, 0.0  ;;  %v644_v61 = vmul.f32 0.1, %v580_v53 }
 0x168   : > { %v661_v62 = vsel %vm597_vm6, %v565_v46, %v629_v57  ;;  %v677_v63 = vsel %vm613_vm7, %v581_v47, %v645_v59  ;;  %v567_v0 = vadd.f32 %v1342_v58, %v528_v48  ;;  %v583_v1 = vadd.f32 %v1342_v58, %v544_v49 }
 0x169   : > { %694 = vst.msk [vmem:[%s1355_s28 + $0x58] sm:$0xff] %vm682_vm0, %v661_v62  ;;  %710 = vst.msk [vmem:[%s1355_s28 + $0xd8] sm:$0xff] %vm682_vm0, %v677_v63  ;;  %v660_v2 = vsel %vm596_vm8, %v564_v52, %v628_v60  ;;  %v676_v3 = vsel %vm612_vm9, %v580_v53, %v644_v61  ;;  %v566_v4 = vadd.f32 %v1342_v58, %v527_v54 }
 0x16a   : > { %v582_v5 = vadd.f32 %v1342_v58, %v543_v55  ;;  %693 = vst.msk [vmem:[%s1355_s28 + $0x50] sm:$0xff] %vm682_vm0, %v660_v2  ;;  %709 = vst.msk [vmem:[%s1355_s28 + $0xd0] sm:$0xff] %vm682_vm0, %v676_v3  ;;  %vm599_vm10 = vcmp.gt.f32.partialorder %v567_v0, 0.0  ;;  %v631_v6 = vmul.f32 0.1, %v567_v0  ;;  %vm615_vm11 = vcmp.gt.f32.partialorder %v583_v1, 0.0 }
 0x16b   : > { %v647_v7 = vmul.f32 0.1, %v583_v1  ;;  %vm598_vm12 = vcmp.gt.f32.partialorder %v566_v4, 0.0  ;;  %v630_v8 = vmul.f32 0.1, %v566_v4  ;;  %v530_v12 = vmul.f32 %v913_v44, %v1337_v56 }
 0x16c   : > { %vm614_vm13 = vcmp.gt.f32.partialorder %v582_v5, 0.0  ;;  %v646_v9 = vmul.f32 0.1, %v582_v5  ;;  %v663_v10 = vsel %vm599_vm10, %v567_v0, %v631_v6  ;;  %v546_v13 = vmul.f32 %v937_v45, %v1337_v56 }
 0x16d   : > { %v679_v11 = vsel %vm615_vm11, %v583_v1, %v647_v7  ;;  %696 = vst.msk [vmem:[%s1355_s28 + $0x68] sm:$0xff] %vm682_vm0, %v663_v10  ;;  %v662_v14 = vsel %vm598_vm12, %v566_v4, %v630_v8  ;;  %v529_v16 = vmul.f32 %v1337_v56, %v419_v50  ;;  %v545_v17 = vmul.f32 %v1337_v56, %v499_v51 }
 0x16e   : > { %712 = vst.msk [vmem:[%s1355_s28 + $0xe8] sm:$0xff] %vm682_vm0, %v679_v11  ;;  %v678_v15 = vsel %vm614_vm13, %v582_v5, %v646_v9  ;;  %695 = vst.msk [vmem:[%s1355_s28 + $0x60] sm:$0xff] %vm682_vm0, %v662_v14  ;;  %v569_v18 = vadd.f32 %v1342_v58, %v530_v12  ;;  %v585_v19 = vadd.f32 %v1342_v58, %v546_v13 }
 0x16f   : > { %711 = vst.msk [vmem:[%s1355_s28 + $0xe0] sm:$0xff] %vm682_vm0, %v678_v15  ;;  %v568_v20 = vadd.f32 %v1342_v58, %v529_v16  ;;  %v584_v21 = vadd.f32 %v1342_v58, %v545_v17 }
 0x170   : > { %vm601_vm14 = vcmp.gt.f32.partialorder %v569_v18, 0.0  ;;  %v633_v22 = vmul.f32 0.1, %v569_v18  ;;  %vm617_vm15 = vcmp.gt.f32.partialorder %v585_v19, 0.0  ;;  %v649_v56 = vmul.f32 0.1, %v585_v19 }
 0x171   : > { %vm600_vm1 = vcmp.gt.f32.partialorder %v568_v20, 0.0  ;;  %v632_v23 = vmul.f32 0.1, %v568_v20  ;;  %vm616_vm2 = vcmp.gt.f32.partialorder %v584_v21, 0.0  ;;  %v648_v24 = vmul.f32 0.1, %v584_v21 }
 0x172   : > { %v665_v25 = vsel %vm601_vm14, %v569_v18, %v633_v22  ;;  %v681_v26 = vsel %vm617_vm15, %v585_v19, %v649_v56 }
 0x173   : > { %698 = vst.msk [vmem:[%s1355_s28 + $0x78] sm:$0xff] %vm682_vm0, %v665_v25  ;;  %714 = vst.msk [vmem:[%s1355_s28 + $0xf8] sm:$0xff] %vm682_vm0, %v681_v26  ;;  %v664_v27 = vsel %vm600_vm1, %v568_v20, %v632_v23  ;;  %v680_v28 = vsel %vm616_vm2, %v584_v21, %v648_v24 }
 0x174   : > { %697 = vst.msk [vmem:[%s1355_s28 + $0x70] sm:$0xff] %vm682_vm0, %v664_v27  ;;  %713 = vst.msk [vmem:[%s1355_s28 + $0xf0] sm:$0xff] %vm682_vm0, %v680_v28 }
 0x175 PF: > { %s1507_s27 = smov %s1241_s15  ;;  %p15_p6 = scmp.ge.s32.totalorder %s1212_s26, 4  }
 0x176   : > { %s1508_s15 = smov %s1126_s16  ;;  %s1509_s16 = smov %s1130_s17 }
 0x177   : > { %s1510_s17 = smov %s1507_s27  ;;  %s1511_s18 = smov %s1212_s26 }
 0x178   :  { %17 = sbr.rel (!%p15_p6) target bundleno = 4 (0x4), region = 80 }
 0x17f   :  { %737 = vsyncpa [#allocation3], 1 }
 0x180   :  { %739 = vsyncpa [#allocation3 + $0x1], 1 }
 0x181   :  { %740 = vsyncpa [#allocation5], 1 }

</bundles_post_ra>
